<compile_context>
chip_gen: v7x
topology: tpu7x:2x2x1
jax: 0.10.0
libtpu: 0.0.40
codegen_flags: <defaults>
</compile_context>

<pallas_src>
import functools

import numpy as np
import jax
import jax.numpy as jnp
from jax import lax
from jax.experimental import pallas as pl
from jax.experimental.pallas import tpu as pltpu

NEG_INF = -10000.0


def _viterbi_kernel(lmax_smem,       # scalar prefetch: (n_blocks,) int32 in SMEM
                    lens_ref,        # (1, B) int32  per-sentence lengths (lane layout)
                    feats_ref,       # (T, K, B) f32 time-major emissions, tags on sublanes
                    trans_ref,       # (K, K) f32    trans[i, j] = score of j -> i
                    stop_ref,        # (K, 1) f32    transitions[stop_tag] as a column
                    path_ref,        # out: (T, 1, B) int32  best path, time-major
                    probs_ref,       # out: (T, K, B) f32    per-token tag confidences
                    bptrs_scratch,   # VMEM scratch: (T, K, B) int32 backpointers
                    *, start_tag):
    T, K, B = feats_ref.shape
    g = pl.program_id(0)
    L_max = jnp.minimum(lmax_smem[g], T)       # max sentence length in this block

    lens_row = lens_ref[...]                   # (1, B) int32
    trans = trans_ref[...]                     # (K, K)
    stop_col = stop_ref[...]                   # (K, 1)
    row_i = lax.broadcasted_iota(jnp.int32, (K, B), 0)   # tag id on sublanes

    # Loop-invariant: pre-broadcast the K transition columns once. JAX does not
    # CSE broadcast_in_dim, so doing this inside the t-loop would redo K
    # broadcasts per timestep on the latency-critical serial path.
    trans_bcast = [jnp.broadcast_to(trans[:, j:j + 1], (K, B)) for j in range(K)]

    # init forward variable: only <START> is reachable
    fv0 = jnp.where(row_i == start_tag, 0.0, NEG_INF).astype(jnp.float32)

    def fwd_step(t, fv):
        feat = feats_ref[t]                    # (K, B) emissions at timestep t
        # Viterbi recursion over source tags j:
        #   new_fv[i, b] = max_j(fv[j, b] + trans[i, j]) + feat[i, b]
        # Pairwise tree max/argmax; strict '>' with lower-index group first
        # preserves FIRST-argmax (torch/numpy) tie semantics.
        cands = [(trans_bcast[j] + fv[j:j + 1, :], j) for j in range(K)]
        while len(cands) > 1:
            nxt = []
            for a in range(0, len(cands) - 1, 2):
                sa, ia = cands[a]
                sb, ib = cands[a + 1]
                take = sb > sa
                nxt.append((jnp.where(take, sb, sa), jnp.where(take, ib, ia)))
            if len(cands) % 2:
                nxt.append(cands[-1])          # leftover covers the highest indices
            cands = nxt
        best, bp = cands[0]
        new_fv = best + feat
        bptrs_scratch[t] = bp.astype(jnp.int32)            # lane-dense row store

        # fused per-token tag confidences: exact softmax over tags (sublanes)
        active = jnp.broadcast_to(t < lens_row, (K, B))    # one broadcast, reused
        m = jnp.max(new_fv, axis=0, keepdims=True)         # (1, B)
        e = jnp.exp(new_fv - m)
        s = jnp.sum(e, axis=0, keepdims=True)              # (1, B)
        probs_ref[t] = jnp.where(active, e / s, 0.0)       # exact divide (correctness)

        # freeze fv for sentences that already ended
        return jnp.where(active, new_fv, fv)

    fv = lax.fori_loop(0, L_max, fwd_step, fv0)

    # rows past the block's max length: zero-fill only the tail (rows < L_max
    # were already written inside the loops — no full-block zero pass).
    zero_p = jnp.zeros((K, B), jnp.float32)
    zero_t = jnp.zeros((1, B), jnp.int32)

    def tail_zero(t, carry):
        probs_ref[t] = zero_p
        path_ref[t] = zero_t
        return carry

    lax.fori_loop(L_max, T, tail_zero, 0)

    # terminal transition into <STOP>; first-argmax per sentence
    terminal = fv + stop_col                               # (K, B)
    tmax = jnp.max(terminal, axis=0, keepdims=True)
    best_last = jnp.min(jnp.where(terminal == tmax, row_i, K),
                        axis=0, keepdims=True).astype(jnp.int32)   # (1, B)

    def bt_step(i, tag):                                   # tag: (1, B) int32
        t = L_max - 1 - i
        valid = t < lens_row                               # (1, B)
        path_ref[t] = jnp.where(valid, tag, 0)             # O(1) per-step row store
        bptr_row = bptrs_scratch[t]                        # (K, B) int32
        nxt = jnp.sum(jnp.where(row_i == tag, bptr_row, 0),
                      axis=0, keepdims=True).astype(jnp.int32)
        return jnp.where(valid, nxt, tag)

    _ = lax.fori_loop(0, L_max, bt_step, best_last)


@functools.partial(jax.jit, static_argnames=("start_tag", "stop_tag", "batch_block"))
def viterbi_decode(features, lengths, transitions, *, start_tag, stop_tag,
                   batch_block=128):
    B, T, K = features.shape
    n_blocks = -(-B // batch_block)
    B_pad = n_blocks * batch_block

    feats = features.astype(jnp.float32)
    lens = lengths.astype(jnp.int32)
    if B_pad != B:
        feats = jnp.pad(feats, ((0, B_pad - B), (0, 0), (0, 0)))
        lens = jnp.pad(lens, (0, B_pad - B))               # padded sentences: length 0

    # Layout plumbing (wrapper side): time-major / tag-major features so each
    # timestep is a lane-dense (K, batch_block) sublane x lane tile.
    feats_tkb = jnp.transpose(feats, (1, 2, 0))            # (T, K, B_pad)
    lens_row = lens.reshape(1, B_pad)
    block_lmax = jnp.max(lens.reshape(n_blocks, batch_block), axis=1).astype(jnp.int32)
    trans = transitions.astype(jnp.float32)                # (K, K)
    stop_col = transitions[stop_tag].astype(jnp.float32).reshape(K, 1)

    kernel = functools.partial(_viterbi_kernel, start_tag=start_tag)
    path_t1b, probs_tkb = pl.pallas_call(
        kernel,
        out_shape=(jax.ShapeDtypeStruct((T, 1, B_pad), jnp.int32),
                   jax.ShapeDtypeStruct((T, K, B_pad), jnp.float32)),
        grid_spec=pltpu.PrefetchScalarGridSpec(
            num_scalar_prefetch=1,                         # per-block L_max -> SMEM
            grid=(n_blocks,),
            in_specs=[
                pl.BlockSpec((1, batch_block), lambda g, lm: (0, g)),        # lengths
                pl.BlockSpec((T, K, batch_block), lambda g, lm: (0, 0, g)),  # features
                pl.BlockSpec((K, K), lambda g, lm: (0, 0)),                  # transitions
                pl.BlockSpec((K, 1), lambda g, lm: (0, 0)),                  # <STOP> col
            ],
            out_specs=[
                pl.BlockSpec((T, 1, batch_block), lambda g, lm: (0, 0, g)),  # best path
                pl.BlockSpec((T, K, batch_block), lambda g, lm: (0, 0, g)),  # tag probs
            ],
            scratch_shapes=[pltpu.VMEM((T, K, batch_block), jnp.int32)],     # backptrs
        ),
        compiler_params=pltpu.CompilerParams(
            dimension_semantics=("parallel",)),            # batch blocks independent
    )(block_lmax, lens_row, feats_tkb, trans, stop_col)

    path = jnp.transpose(path_t1b[:, 0, :], (1, 0))        # (B_pad, T)
    probs = jnp.transpose(probs_tkb, (2, 0, 1))            # (B_pad, T, K)
    return path[:B], probs[:B]


def _reference_viterbi(features, lengths, transitions, start_tag, stop_tag):
    """Pure-numpy port of flair ViterbiDecoder.decode numeric core."""
    B, T, K = features.shape
    paths = np.zeros((B, T), np.int32)
    probs = np.zeros((B, T, K), np.float32)
    for b in range(B):
        L = int(lengths[b])
        fv = np.full((K,), NEG_INF, np.float32)
        fv[start_tag] = 0.0
        bscores = np.zeros((T, K), np.float32)
        bptrs = np.full((T, K), stop_tag, np.int64)
        for t in range(L):
            A = fv[None, :] + transitions          # A[i, j] = fv[j] + trans[i, j]
            bptrs[t] = A.argmax(axis=1)
            fv = A.max(axis=1).astype(np.float32) + features[b, t]
            bscores[t] = fv
        terminal = fv + transitions[stop_tag]
        tag = int(terminal.argmax())
        for t in range(L - 1, -1, -1):
            paths[b, t] = tag
            tag = int(bptrs[t, tag])
        m = bscores.max(axis=1, keepdims=True)
        e = np.exp(bscores - m)
        p = e / e.sum(axis=1, keepdims=True)
        p[L:] = 0.0
        probs[b] = p
    return paths, probs


def _bio_spans(tags, confs):
    """Minimal stand-in for flair.get_spans_from_bio (BIO grouping + mean score)."""
    spans = []
    start, ent, scores = None, None, []
    for i, tg in enumerate(list(tags) + ["O"]):
        if start is not None and not (tg.startswith("I-") and tg[2:] == ent):
            spans.append((start, i - 1, ent, float(np.mean(scores))))
            start, ent, scores = None, None, []
        if tg.startswith("B-") or (tg.startswith("I-") and start is None):
            start, ent, scores = i, tg[2:], [confs[i]]
        elif tg.startswith("I-"):
            scores.append(confs[i])
    return spans


if __name__ == "__main__":
    # synthetic NER tagset (flair appends <START>/<STOP> as the last two tags)
    TAGS = ["O", "B-PER", "I-PER", "B-ORG", "I-ORG", "B-LOC", "I-LOC",
            "B-MISC", "I-MISC", "<unk>", "<START>", "<STOP>"]
    K = len(TAGS)                 # 12
    START, STOP = K - 2, K - 1
    B, T = 2, 8

    key = jax.random.PRNGKey(0)
    kf, kt = jax.random.split(key)
    features = jax.random.normal(kf, (B, T, K), dtype=jnp.float32) * 3.0
    transitions = jax.random.normal(kt, (K, K), dtype=jnp.float32)
    # flair constraints: never transition into <START>, never leave <STOP>
    transitions = transitions.at[START, :].set(NEG_INF)
    transitions = transitions.at[:, STOP].set(NEG_INF)
    lengths = jnp.array([T, T - 3], dtype=jnp.int32)   # sorted_lengths (descending)

    paths, probs = viterbi_decode(features, lengths, transitions,
                                  start_tag=START, stop_tag=STOP)
    paths = jax.block_until_ready(paths)
    probs = jax.block_until_ready(probs)

    paths_np = np.asarray(paths)
    probs_np = np.asarray(probs)

    # check against the pure-numpy flair reference
    ref_paths, ref_probs = _reference_viterbi(np.asarray(features),
                                              np.asarray(lengths),
                                              np.asarray(transitions),
                                              START, STOP)
    assert np.array_equal(paths_np, ref_paths), "Viterbi path mismatch"
    # exact divide in the fused softmax; tolerance covers f32 exp differences
    assert np.allclose(probs_np, ref_probs, atol=2e-3), "tag probability mismatch"

    # glue: BIO span grouping + dict formatting (the flair-object part of forward)
    # TODO(synk): flair Sentence/Span objects, add_label bookkeeping and span text
    # are Python-side string handling with no Pallas equivalent; token indices are
    # used in place of span text.
    dict_format = {}
    sentence_list = []
    L0 = int(lengths[0])
    tags0 = [TAGS[int(t)] for t in paths_np[0, :L0]]
    confs0 = [float(probs_np[0, t, paths_np[0, t]]) for t in range(L0)]
    for (s, e, ent, score) in _bio_spans(tags0, confs0):
        sentence_list.append({"entity_group": ent, "start": s,
                              "word": f"tokens[{s}:{e + 1}]", "end": e,
                              "score": int(score * 100)})
    dict_format["sentence_0"] = sentence_list

    print("KERNEL_OK")
</pallas_src>

<mosaic_0001>
module attributes {stable_mosaic.version = 11 : i64} {
  func.func @_viterbi_kernel(%arg0: i32, %arg1: memref<1xi32, #tpu.memory_space<smem>>, %arg2: memref<1x128xi32, #tpu.memory_space<vmem>>, %arg3: memref<8x12x128xf32, #tpu.memory_space<vmem>>, %arg4: memref<12x12xf32, #tpu.memory_space<vmem>>, %arg5: memref<12x1xf32, #tpu.memory_space<vmem>>, %arg6: memref<8x1x128xi32, #tpu.memory_space<vmem>>, %arg7: memref<8x12x128xf32, #tpu.memory_space<vmem>>, %arg8: memref<8x12x128xi32, #tpu.memory_space<vmem>>) attributes {dimension_semantics = [#tpu.dimension_semantics<parallel>], iteration_bounds = array<i64: 1>, scalar_prefetch = 1 : i64, scratch_operands = 1 : i64, tpu.core_type = #tpu.core_type<tc>, window_params = [{transform_indices = @transform_0, window_bounds = array<i64: 1, 128>}, {transform_indices = @transform_1, window_bounds = array<i64: 8, 12, 128>}, {pipeline_mode = #tpu.pipeline_mode<synchronous>, transform_indices = @transform_2, window_bounds = array<i64: 12, 12>}, {pipeline_mode = #tpu.pipeline_mode<synchronous>, transform_indices = @transform_3, window_bounds = array<i64: 12, 1>}, {transform_indices = @transform_4, window_bounds = array<i64: 8, 1, 128>}, {transform_indices = @transform_5, window_bounds = array<i64: 8, 12, 128>}]} {
    %0 = arith.index_cast %arg0 : i32 to index
    %1 = memref.load %arg1[%0] : memref<1xi32, #tpu.memory_space<smem>>
    %c8_i32 = arith.constant 8 : i32
    %2 = arith.minsi %1, %c8_i32 : i32
    %c0 = arith.constant 0 : index
    %c0_0 = arith.constant 0 : index
    %3 = vector.load %arg2[%c0, %c0_0] : memref<1x128xi32, #tpu.memory_space<vmem>>, vector<1x128xi32>
    %c0_1 = arith.constant 0 : index
    %c0_2 = arith.constant 0 : index
    %4 = vector.load %arg4[%c0_1, %c0_2] : memref<12x12xf32, #tpu.memory_space<vmem>>, vector<12x12xf32>
    %c0_3 = arith.constant 0 : index
    %c0_4 = arith.constant 0 : index
    %5 = vector.load %arg5[%c0_3, %c0_4] : memref<12x1xf32, #tpu.memory_space<vmem>>, vector<12x1xf32>
    %6 = tpu.iota {dimensions = array<i32: 0>} : vector<12x128xi32>
    %7 = vector.extract_strided_slice %4 {offsets = [0, 0], sizes = [12, 1], strides = [1, 1]} : vector<12x12xf32> to vector<12x1xf32>
    %8 = vector.shape_cast %7 : vector<12x1xf32> to vector<12x1xf32>
    %9 = vector.broadcast %8 : vector<12x1xf32> to vector<12x128xf32>
    %10 = vector.extract_strided_slice %4 {offsets = [0, 1], sizes = [12, 1], strides = [1, 1]} : vector<12x12xf32> to vector<12x1xf32>
    %11 = vector.shape_cast %10 : vector<12x1xf32> to vector<12x1xf32>
    %12 = vector.broadcast %11 : vector<12x1xf32> to vector<12x128xf32>
    %13 = vector.extract_strided_slice %4 {offsets = [0, 2], sizes = [12, 1], strides = [1, 1]} : vector<12x12xf32> to vector<12x1xf32>
    %14 = vector.shape_cast %13 : vector<12x1xf32> to vector<12x1xf32>
    %15 = vector.broadcast %14 : vector<12x1xf32> to vector<12x128xf32>
    %16 = vector.extract_strided_slice %4 {offsets = [0, 3], sizes = [12, 1], strides = [1, 1]} : vector<12x12xf32> to vector<12x1xf32>
    %17 = vector.shape_cast %16 : vector<12x1xf32> to vector<12x1xf32>
    %18 = vector.broadcast %17 : vector<12x1xf32> to vector<12x128xf32>
    %19 = vector.extract_strided_slice %4 {offsets = [0, 4], sizes = [12, 1], strides = [1, 1]} : vector<12x12xf32> to vector<12x1xf32>
    %20 = vector.shape_cast %19 : vector<12x1xf32> to vector<12x1xf32>
    %21 = vector.broadcast %20 : vector<12x1xf32> to vector<12x128xf32>
    %22 = vector.extract_strided_slice %4 {offsets = [0, 5], sizes = [12, 1], strides = [1, 1]} : vector<12x12xf32> to vector<12x1xf32>
    %23 = vector.shape_cast %22 : vector<12x1xf32> to vector<12x1xf32>
    %24 = vector.broadcast %23 : vector<12x1xf32> to vector<12x128xf32>
    %25 = vector.extract_strided_slice %4 {offsets = [0, 6], sizes = [12, 1], strides = [1, 1]} : vector<12x12xf32> to vector<12x1xf32>
    %26 = vector.shape_cast %25 : vector<12x1xf32> to vector<12x1xf32>
    %27 = vector.broadcast %26 : vector<12x1xf32> to vector<12x128xf32>
    %28 = vector.extract_strided_slice %4 {offsets = [0, 7], sizes = [12, 1], strides = [1, 1]} : vector<12x12xf32> to vector<12x1xf32>
    %29 = vector.shape_cast %28 : vector<12x1xf32> to vector<12x1xf32>
    %30 = vector.broadcast %29 : vector<12x1xf32> to vector<12x128xf32>
    %31 = vector.extract_strided_slice %4 {offsets = [0, 8], sizes = [12, 1], strides = [1, 1]} : vector<12x12xf32> to vector<12x1xf32>
    %32 = vector.shape_cast %31 : vector<12x1xf32> to vector<12x1xf32>
    %33 = vector.broadcast %32 : vector<12x1xf32> to vector<12x128xf32>
    %34 = vector.extract_strided_slice %4 {offsets = [0, 9], sizes = [12, 1], strides = [1, 1]} : vector<12x12xf32> to vector<12x1xf32>
    %35 = vector.shape_cast %34 : vector<12x1xf32> to vector<12x1xf32>
    %36 = vector.broadcast %35 : vector<12x1xf32> to vector<12x128xf32>
    %37 = vector.extract_strided_slice %4 {offsets = [0, 10], sizes = [12, 1], strides = [1, 1]} : vector<12x12xf32> to vector<12x1xf32>
    %38 = vector.shape_cast %37 : vector<12x1xf32> to vector<12x1xf32>
    %39 = vector.broadcast %38 : vector<12x1xf32> to vector<12x128xf32>
    %40 = vector.extract_strided_slice %4 {offsets = [0, 11], sizes = [12, 1], strides = [1, 1]} : vector<12x12xf32> to vector<12x1xf32>
    %41 = vector.shape_cast %40 : vector<12x1xf32> to vector<12x1xf32>
    %42 = vector.broadcast %41 : vector<12x1xf32> to vector<12x128xf32>
    %c10_i32 = arith.constant 10 : i32
    %43 = vector.broadcast %c10_i32 : i32 to vector<12x128xi32>
    %44 = arith.cmpi eq, %6, %43 : vector<12x128xi32>
    %cst = arith.constant 0.000000e+00 : f32
    %cst_5 = arith.constant -1.000000e+04 : f32
    %45 = vector.broadcast %cst : f32 to vector<12x128xf32>
    %46 = vector.broadcast %cst_5 : f32 to vector<12x128xf32>
    %47 = arith.select %44, %45, %46 : vector<12x128xi1>, vector<12x128xf32>
    %c0_i32 = arith.constant 0 : i32
    %48 = arith.subi %2, %c0_i32 : i32
    %49 = arith.addi %c0_i32, %48 : i32
    %c1_i32 = arith.constant 1 : i32
    %50 = scf.for %arg9 = %c0_i32 to %49 step %c1_i32 iter_args(%arg10 = %47) -> (vector<12x128xf32>)  : i32 {
      %68 = arith.index_cast %arg9 : i32 to index
      %c0_15 = arith.constant 0 : index
      %c0_16 = arith.constant 0 : index
      %69 = vector.load %arg3[%68, %c0_15, %c0_16] : memref<8x12x128xf32, #tpu.memory_space<vmem>>, vector<1x12x128xf32>
      %70 = vector.shape_cast %69 : vector<1x12x128xf32> to vector<12x128xf32>
      %71 = vector.extract_strided_slice %arg10 {offsets = [0, 0], sizes = [1, 128], strides = [1, 1]} : vector<12x128xf32> to vector<1x128xf32>
      %72 = vector.broadcast %71 : vector<1x128xf32> to vector<12x128xf32>
      %73 = arith.addf %9, %72 : vector<12x128xf32>
      %74 = vector.extract_strided_slice %arg10 {offsets = [1, 0], sizes = [1, 128], strides = [1, 1]} : vector<12x128xf32> to vector<1x128xf32>
      %75 = vector.broadcast %74 : vector<1x128xf32> to vector<12x128xf32>
      %76 = arith.addf %12, %75 : vector<12x128xf32>
      %77 = vector.extract_strided_slice %arg10 {offsets = [2, 0], sizes = [1, 128], strides = [1, 1]} : vector<12x128xf32> to vector<1x128xf32>
      %78 = vector.broadcast %77 : vector<1x128xf32> to vector<12x128xf32>
      %79 = arith.addf %15, %78 : vector<12x128xf32>
      %80 = vector.extract_strided_slice %arg10 {offsets = [3, 0], sizes = [1, 128], strides = [1, 1]} : vector<12x128xf32> to vector<1x128xf32>
      %81 = vector.broadcast %80 : vector<1x128xf32> to vector<12x128xf32>
      %82 = arith.addf %18, %81 : vector<12x128xf32>
      %83 = vector.extract_strided_slice %arg10 {offsets = [4, 0], sizes = [1, 128], strides = [1, 1]} : vector<12x128xf32> to vector<1x128xf32>
      %84 = vector.broadcast %83 : vector<1x128xf32> to vector<12x128xf32>
      %85 = arith.addf %21, %84 : vector<12x128xf32>
      %86 = vector.extract_strided_slice %arg10 {offsets = [5, 0], sizes = [1, 128], strides = [1, 1]} : vector<12x128xf32> to vector<1x128xf32>
      %87 = vector.broadcast %86 : vector<1x128xf32> to vector<12x128xf32>
      %88 = arith.addf %24, %87 : vector<12x128xf32>
      %89 = vector.extract_strided_slice %arg10 {offsets = [6, 0], sizes = [1, 128], strides = [1, 1]} : vector<12x128xf32> to vector<1x128xf32>
      %90 = vector.broadcast %89 : vector<1x128xf32> to vector<12x128xf32>
      %91 = arith.addf %27, %90 : vector<12x128xf32>
      %92 = vector.extract_strided_slice %arg10 {offsets = [7, 0], sizes = [1, 128], strides = [1, 1]} : vector<12x128xf32> to vector<1x128xf32>
      %93 = vector.broadcast %92 : vector<1x128xf32> to vector<12x128xf32>
      %94 = arith.addf %30, %93 : vector<12x128xf32>
      %95 = vector.extract_strided_slice %arg10 {offsets = [8, 0], sizes = [1, 128], strides = [1, 1]} : vector<12x128xf32> to vector<1x128xf32>
      %96 = vector.broadcast %95 : vector<1x128xf32> to vector<12x128xf32>
      %97 = arith.addf %33, %96 : vector<12x128xf32>
      %98 = vector.extract_strided_slice %arg10 {offsets = [9, 0], sizes = [1, 128], strides = [1, 1]} : vector<12x128xf32> to vector<1x128xf32>
      %99 = vector.broadcast %98 : vector<1x128xf32> to vector<12x128xf32>
      %100 = arith.addf %36, %99 : vector<12x128xf32>
      %101 = vector.extract_strided_slice %arg10 {offsets = [10, 0], sizes = [1, 128], strides = [1, 1]} : vector<12x128xf32> to vector<1x128xf32>
      %102 = vector.broadcast %101 : vector<1x128xf32> to vector<12x128xf32>
      %103 = arith.addf %39, %102 : vector<12x128xf32>
      %104 = vector.extract_strided_slice %arg10 {offsets = [11, 0], sizes = [1, 128], strides = [1, 1]} : vector<12x128xf32> to vector<1x128xf32>
      %105 = vector.broadcast %104 : vector<1x128xf32> to vector<12x128xf32>
      %106 = arith.addf %42, %105 : vector<12x128xf32>
      %107 = arith.cmpf ogt, %76, %73 : vector<12x128xf32>
      %108 = arith.select %107, %76, %73 : vector<12x128xi1>, vector<12x128xf32>
      %c1_i32_17 = arith.constant 1 : i32
      %c0_i32_18 = arith.constant 0 : i32
      %109 = vector.broadcast %c1_i32_17 : i32 to vector<12x128xi32>
      %110 = vector.broadcast %c0_i32_18 : i32 to vector<12x128xi32>
      %111 = arith.select %107, %109, %110 : vector<12x128xi1>, vector<12x128xi32>
      %112 = arith.cmpf ogt, %82, %79 : vector<12x128xf32>
      %113 = arith.select %112, %82, %79 : vector<12x128xi1>, vector<12x128xf32>
      %c3_i32 = arith.constant 3 : i32
      %c2_i32 = arith.constant 2 : i32
      %114 = vector.broadcast %c3_i32 : i32 to vector<12x128xi32>
      %115 = vector.broadcast %c2_i32 : i32 to vector<12x128xi32>
      %116 = arith.select %112, %114, %115 : vector<12x128xi1>, vector<12x128xi32>
      %117 = arith.cmpf ogt, %88, %85 : vector<12x128xf32>
      %118 = arith.select %117, %88, %85 : vector<12x128xi1>, vector<12x128xf32>
      %c5_i32 = arith.constant 5 : i32
      %c4_i32 = arith.constant 4 : i32
      %119 = vector.broadcast %c5_i32 : i32 to vector<12x128xi32>
      %120 = vector.broadcast %c4_i32 : i32 to vector<12x128xi32>
      %121 = arith.select %117, %119, %120 : vector<12x128xi1>, vector<12x128xi32>
      %122 = arith.cmpf ogt, %94, %91 : vector<12x128xf32>
      %123 = arith.select %122, %94, %91 : vector<12x128xi1>, vector<12x128xf32>
      %c7_i32 = arith.constant 7 : i32
      %c6_i32 = arith.constant 6 : i32
      %124 = vector.broadcast %c7_i32 : i32 to vector<12x128xi32>
      %125 = vector.broadcast %c6_i32 : i32 to vector<12x128xi32>
      %126 = arith.select %122, %124, %125 : vector<12x128xi1>, vector<12x128xi32>
      %127 = arith.cmpf ogt, %100, %97 : vector<12x128xf32>
      %128 = arith.select %127, %100, %97 : vector<12x128xi1>, vector<12x128xf32>
      %c9_i32 = arith.constant 9 : i32
      %c8_i32_19 = arith.constant 8 : i32
      %129 = vector.broadcast %c9_i32 : i32 to vector<12x128xi32>
      %130 = vector.broadcast %c8_i32_19 : i32 to vector<12x128xi32>
      %131 = arith.select %127, %129, %130 : vector<12x128xi1>, vector<12x128xi32>
      %132 = arith.cmpf ogt, %106, %103 : vector<12x128xf32>
      %133 = arith.select %132, %106, %103 : vector<12x128xi1>, vector<12x128xf32>
      %c11_i32 = arith.constant 11 : i32
      %c10_i32_20 = arith.constant 10 : i32
      %134 = vector.broadcast %c11_i32 : i32 to vector<12x128xi32>
      %135 = vector.broadcast %c10_i32_20 : i32 to vector<12x128xi32>
      %136 = arith.select %132, %134, %135 : vector<12x128xi1>, vector<12x128xi32>
      %137 = arith.cmpf ogt, %113, %108 : vector<12x128xf32>
      %138 = arith.select %137, %113, %108 : vector<12x128xi1>, vector<12x128xf32>
      %139 = arith.select %137, %116, %111 : vector<12x128xi1>, vector<12x128xi32>
      %140 = arith.cmpf ogt, %123, %118 : vector<12x128xf32>
      %141 = arith.select %140, %123, %118 : vector<12x128xi1>, vector<12x128xf32>
      %142 = arith.select %140, %126, %121 : vector<12x128xi1>, vector<12x128xi32>
      %143 = arith.cmpf ogt, %133, %128 : vector<12x128xf32>
      %144 = arith.select %143, %133, %128 : vector<12x128xi1>, vector<12x128xf32>
      %145 = arith.select %143, %136, %131 : vector<12x128xi1>, vector<12x128xi32>
      %146 = arith.cmpf ogt, %141, %138 : vector<12x128xf32>
      %147 = arith.select %146, %141, %138 : vector<12x128xi1>, vector<12x128xf32>
      %148 = arith.select %146, %142, %139 : vector<12x128xi1>, vector<12x128xi32>
      %149 = arith.cmpf ogt, %144, %147 : vector<12x128xf32>
      %150 = arith.select %149, %144, %147 : vector<12x128xi1>, vector<12x128xf32>
      %151 = arith.select %149, %145, %148 : vector<12x128xi1>, vector<12x128xi32>
      %152 = arith.addf %150, %70 : vector<12x128xf32>
      %153 = arith.index_cast %arg9 : i32 to index
      %c0_21 = arith.constant 0 : index
      %c0_22 = arith.constant 0 : index
      %154 = vector.load %arg8[%153, %c0_21, %c0_22] : memref<8x12x128xi32, #tpu.memory_space<vmem>>, vector<1x12x128xi32>
      %155 = vector.shape_cast %154 : vector<1x12x128xi32> to vector<12x128xi32>
      %156 = vector.shape_cast %151 : vector<12x128xi32> to vector<1x12x128xi32>
      tpu.vector_store %arg8[%153, %c0_21, %c0_22], %156 {strides = array<i32>} : memref<8x12x128xi32, #tpu.memory_space<vmem>>, vector<1x12x128xi32>,
      %157 = vector.broadcast %arg9 : i32 to vector<1x128xi32>
      %158 = arith.cmpi slt, %157, %3 : vector<1x128xi32>
      %159 = vector.shape_cast %158 : vector<1x128xi1> to vector<1x128xi1>
      %160 = vector.broadcast %159 : vector<1x128xi1> to vector<12x128xi1>
      %cst_23 = arith.constant dense<0xFF800000> : vector<128xf32>
      %161 = vector.multi_reduction <maximumf>, %152, %cst_23 [0] : vector<12x128xf32> to vector<128xf32>
      %162 = vector.shape_cast %161 : vector<128xf32> to vector<1x128xf32>
      %163 = vector.broadcast %162 : vector<1x128xf32> to vector<12x128xf32>
      %164 = arith.subf %152, %163 : vector<12x128xf32>
      %165 = math.exp %164 : vector<12x128xf32>
      %cst_24 = arith.constant dense<0.000000e+00> : vector<128xf32>
      %166 = vector.multi_reduction <add>, %165, %cst_24 [0] : vector<12x128xf32> to vector<128xf32>
      %167 = vector.shape_cast %166 : vector<128xf32> to vector<1x128xf32>
      %168 = vector.broadcast %167 : vector<1x128xf32> to vector<12x128xf32>
      %169 = arith.divf %165, %168 : vector<12x128xf32>
      %cst_25 = arith.constant 0.000000e+00 : f32
      %170 = vector.broadcast %cst_25 : f32 to vector<12x128xf32>
      %171 = arith.select %160, %169, %170 : vector<12x128xi1>, vector<12x128xf32>
      %172 = arith.index_cast %arg9 : i32 to index
      %c0_26 = arith.constant 0 : index
      %c0_27 = arith.constant 0 : index
      %173 = vector.load %arg7[%172, %c0_26, %c0_27] : memref<8x12x128xf32, #tpu.memory_space<vmem>>, vector<1x12x128xf32>
      %174 = vector.shape_cast %173 : vector<1x12x128xf32> to vector<12x128xf32>
      %175 = vector.shape_cast %171 : vector<12x128xf32> to vector<1x12x128xf32>
      tpu.vector_store %arg7[%172, %c0_26, %c0_27], %175 {strides = array<i32>} : memref<8x12x128xf32, #tpu.memory_space<vmem>>, vector<1x12x128xf32>,
      %176 = arith.select %160, %152, %arg10 : vector<12x128xi1>, vector<12x128xf32>
      scf.yield %176 : vector<12x128xf32>
    }
    %cst_6 = arith.constant 0.000000e+00 : f32
    %51 = vector.broadcast %cst_6 : f32 to vector<12x128xf32>
    %c0_i32_7 = arith.constant 0 : i32
    %52 = vector.broadcast %c0_i32_7 : i32 to vector<1x128xi32>
    %c0_i32_8 = arith.constant 0 : i32
    %c8_i32_9 = arith.constant 8 : i32
    %53 = arith.subi %c8_i32_9, %2 : i32
    %54 = arith.addi %2, %53 : i32
    %c1_i32_10 = arith.constant 1 : i32
    scf.for %arg9 = %2 to %54 step %c1_i32_10  : i32 {
      %68 = arith.index_cast %arg9 : i32 to index
      %c0_15 = arith.constant 0 : index
      %c0_16 = arith.constant 0 : index
      %69 = vector.load %arg7[%68, %c0_15, %c0_16] : memref<8x12x128xf32, #tpu.memory_space<vmem>>, vector<1x12x128xf32>
      %70 = vector.shape_cast %69 : vector<1x12x128xf32> to vector<12x128xf32>
      %71 = vector.shape_cast %51 : vector<12x128xf32> to vector<1x12x128xf32>
      tpu.vector_store %arg7[%68, %c0_15, %c0_16], %71 {strides = array<i32>} : memref<8x12x128xf32, #tpu.memory_space<vmem>>, vector<1x12x128xf32>,
      %72 = arith.index_cast %arg9 : i32 to index
      %c0_17 = arith.constant 0 : index
      %c0_18 = arith.constant 0 : index
      %73 = vector.load %arg6[%72, %c0_17, %c0_18] : memref<8x1x128xi32, #tpu.memory_space<vmem>>, vector<1x1x128xi32>
      %74 = vector.shape_cast %73 : vector<1x1x128xi32> to vector<1x128xi32>
      %75 = vector.shape_cast %52 : vector<1x128xi32> to vector<1x1x128xi32>
      tpu.vector_store %arg6[%72, %c0_17, %c0_18], %75 {strides = array<i32>} : memref<8x1x128xi32, #tpu.memory_space<vmem>>, vector<1x1x128xi32>,
    }
    %55 = vector.broadcast %5 : vector<12x1xf32> to vector<12x128xf32>
    %56 = arith.addf %50, %55 : vector<12x128xf32>
    %cst_11 = arith.constant dense<0xFF800000> : vector<128xf32>
    %57 = vector.multi_reduction <maximumf>, %56, %cst_11 [0] : vector<12x128xf32> to vector<128xf32>
    %58 = vector.shape_cast %57 : vector<128xf32> to vector<1x128xf32>
    %59 = vector.broadcast %58 : vector<1x128xf32> to vector<12x128xf32>
    %60 = arith.cmpf oeq, %56, %59 : vector<12x128xf32>
    %c12_i32 = arith.constant 12 : i32
    %61 = vector.broadcast %c12_i32 : i32 to vector<12x128xi32>
    %62 = arith.select %60, %6, %61 : vector<12x128xi1>, vector<12x128xi32>
    %cst_12 = arith.constant dense<2147483647> : vector<128xi32>
    %63 = vector.multi_reduction <minsi>, %62, %cst_12 [0] : vector<12x128xi32> to vector<128xi32>
    %64 = vector.shape_cast %63 : vector<128xi32> to vector<1x128xi32>
    %c0_i32_13 = arith.constant 0 : i32
    %65 = arith.subi %2, %c0_i32_13 : i32
    %66 = arith.addi %c0_i32_13, %65 : i32
    %c1_i32_14 = arith.constant 1 : i32
    %67 = scf.for %arg9 = %c0_i32_13 to %66 step %c1_i32_14 iter_args(%arg10 = %64) -> (vector<1x128xi32>)  : i32 {
      %c1_i32_15 = arith.constant 1 : i32
      %68 = arith.subi %2, %c1_i32_15 : i32
      %69 = arith.subi %68, %arg9 : i32
      %70 = vector.broadcast %69 : i32 to vector<1x128xi32>
      %71 = arith.cmpi slt, %70, %3 : vector<1x128xi32>
      %c0_i32_16 = arith.constant 0 : i32
      %72 = vector.broadcast %c0_i32_16 : i32 to vector<1x128xi32>
      %73 = arith.select %71, %arg10, %72 : vector<1x128xi1>, vector<1x128xi32>
      %74 = arith.index_cast %69 : i32 to index
      %c0_17 = arith.constant 0 : index
      %c0_18 = arith.constant 0 : index
      %75 = vector.load %arg6[%74, %c0_17, %c0_18] : memref<8x1x128xi32, #tpu.memory_space<vmem>>, vector<1x1x128xi32>
      %76 = vector.shape_cast %75 : vector<1x1x128xi32> to vector<1x128xi32>
      %77 = vector.shape_cast %73 : vector<1x128xi32> to vector<1x1x128xi32>
      tpu.vector_store %arg6[%74, %c0_17, %c0_18], %77 {strides = array<i32>} : memref<8x1x128xi32, #tpu.memory_space<vmem>>, vector<1x1x128xi32>,
      %78 = arith.index_cast %69 : i32 to index
      %c0_19 = arith.constant 0 : index
      %c0_20 = arith.constant 0 : index
      %79 = vector.load %arg8[%78, %c0_19, %c0_20] : memref<8x12x128xi32, #tpu.memory_space<vmem>>, vector<1x12x128xi32>
      %80 = vector.shape_cast %79 : vector<1x12x128xi32> to vector<12x128xi32>
      %81 = vector.broadcast %arg10 : vector<1x128xi32> to vector<12x128xi32>
      %82 = arith.cmpi eq, %6, %81 : vector<12x128xi32>
      %c0_i32_21 = arith.constant 0 : i32
      %83 = vector.broadcast %c0_i32_21 : i32 to vector<12x128xi32>
      %84 = arith.select %82, %80, %83 : vector<12x128xi1>, vector<12x128xi32>
      %cst_22 = arith.constant dense<0> : vector<128xi32>
      %85 = vector.multi_reduction <add>, %84, %cst_22 [0] : vector<12x128xi32> to vector<128xi32>
      %86 = vector.shape_cast %85 : vector<128xi32> to vector<1x128xi32>
      %87 = arith.select %71, %86, %arg10 : vector<1x128xi1>, vector<1x128xi32>
      scf.yield %87 : vector<1x128xi32>
    }
    return
  }
  func.func @transform_0(%arg0: i32, %arg1: memref<1xi32, #tpu.memory_space<smem>>) -> (i32, i32) {
    %c0_i32 = arith.constant 0 : i32
    %c0_i32_0 = arith.constant 0 : i32
    return %c0_i32, %arg0 : i32, i32
  }
  func.func @transform_1(%arg0: i32, %arg1: memref<1xi32, #tpu.memory_space<smem>>) -> (i32, i32, i32) {
    %c0_i32 = arith.constant 0 : i32
    %c0_i32_0 = arith.constant 0 : i32
    %c0_i32_1 = arith.constant 0 : i32
    return %c0_i32, %c0_i32_0, %arg0 : i32, i32, i32
  }
  func.func @transform_2(%arg0: i32, %arg1: memref<1xi32, #tpu.memory_space<smem>>) -> (i32, i32) {
    %c0_i32 = arith.constant 0 : i32
    %c0_i32_0 = arith.constant 0 : i32
    %c0_i32_1 = arith.constant 0 : i32
    return %c0_i32, %c0_i32_0 : i32, i32
  }
  func.func @transform_3(%arg0: i32, %arg1: memref<1xi32, #tpu.memory_space<smem>>) -> (i32, i32) {
    %c0_i32 = arith.constant 0 : i32
    %c0_i32_0 = arith.constant 0 : i32
    %c0_i32_1 = arith.constant 0 : i32
    return %c0_i32, %c0_i32_0 : i32, i32
  }
  func.func @transform_4(%arg0: i32, %arg1: memref<1xi32, #tpu.memory_space<smem>>) -> (i32, i32, i32) {
    %c0_i32 = arith.constant 0 : i32
    %c0_i32_0 = arith.constant 0 : i32
    %c0_i32_1 = arith.constant 0 : i32
    return %c0_i32, %c0_i32_0, %arg0 : i32, i32, i32
  }
  func.func @transform_5(%arg0: i32, %arg1: memref<1xi32, #tpu.memory_space<smem>>) -> (i32, i32, i32) {
    %c0_i32 = arith.constant 0 : i32
    %c0_i32_0 = arith.constant 0 : i32
    %c0_i32_1 = arith.constant 0 : i32
    return %c0_i32, %c0_i32_0, %arg0 : i32, i32, i32
  }
}

</mosaic_0001>

<bundles_post_ra>
// kernel: viterbi_decode.1
= control target key start
LH: loop header
LB: loop body
LE: loop exit
PB: predicated region body
PF: predicated region fallthrough
CT: control target
= control target key end

     0   :  { %v650_v0 = vmov 1   ;;  %v1017_v2 = vmov 0   ;;  %v652_v4 = vmov 2   ;;  %v653_v5 = vmov 3   ;;  %s1010_s3 = inlined_call_operand.vmem [shape: f32[12,12], index: 3, kind: input, shape index: {}]   ;;  %s1011_s0 = inlined_call_operand.<no memory space> [shape: s32[1], index: 0, kind: input, shape index: {}]   ;;  %s1012_s1 = inlined_call_operand.vmem [shape: s32[1,128], index: 1, kind: input, shape index: {}]   ;;  %s1013_s4 = inlined_call_operand.vmem [shape: f32[12,1], index: 4, kind: input, shape index: {}]   ;;  %s1014_s2 = inlined_call_operand.vmem [shape: f32[8,12,128], index: 2, kind: input, shape index: {}]   ;;  %s1015_s5 = inlined_call_operand.vmem [shape: s32[8,1,128], index: 5, kind: output, shape index: {0}]   ;;  %s1016_s6 = inlined_call_operand.vmem [shape: f32[8,12,128], index: 6, kind: output, shape index: {1}]  }
   0x1   :  { %561 = vset.pattern.permute.xlu1 %v650_v0  ;;  %v25_v1 = vld [vmem:[%s1010_s3] sm:$0xff]  ;;  %560 = vset.pattern.permute.xlu0 %v1017_v2  ;;  %v713_v3 = vld [vmem:[%s1010_s3 + $0x8] sm:$0xf]  ;;  %v654_v6 = vmov 4   ;;  %v655_v7 = vmov 5   ;;  %v656_v8 = vmov 6   ;;  %v29_v14 = vlaneseq }
   0x2   :  { %43 = vperm.xlu1 %561, %v25_v1   ;;  %34 = vperm.xlu0 %560, %v25_v1   ;;  %v657_v9 = vmov 8   ;;  %v658_v10 = vmov 9   ;;  %v659_v11 = vmov 7   ;;  %v660_v12 = vmov 11   ;;  %p22_p0 = scmp.lt.s32.totalorder %s1011_s0, 8  ;;  %v748_v18 = vld [vmem:[%s1013_s4] sm:$0xff] }
   0x3   :  { %v661_v13 = vmov 10   ;;  %v725_v15 = vshrl.u32 %v29_v14, 7  ;;  %v743_v17 = vld [vmem:[%s1012_s1] sm:$0x1]  ;;  %v753_v19 = vld [vmem:[%s1013_s4 + $0x8] sm:$0xf] }
   0x4   :  { %s738_s28 = scalar_select %p22_p0, %s1011_s0, 8   ;;  %v662_v20 = vmov -10000.0   ;;  %v809_v47 = vmov -10000.0  }
   0x5   :  { %v729_v16 = vadd.s32 8, %v725_v15  ;;  %p468_p1 = scmp.le.s32.totalorder %s1011_s0, 0 }
   0x6   :  { %47 = vperm.xlu1 %561, %v713_v3   ;;  %39 = vperm.xlu0 %560, %v713_v3   ;;  %v817_v48 = vmov (!%p468_p1), -10000.0   ;;  %s819_s13 = smov (!%p468_p1), 0  }
   0x7   :  { %vm131_vm0 = vcmp.eq.s32.totalorder %v729_v16, 10 }
   0x8   :  { %v133_v21 = vsel %vm131_vm0, 0.0, %v662_v20  }
   0x9   :  { %v1028_v46 = vmov %v133_v21 }
   0xa   :  { %563 = vset.pattern.permute.xlu1 %v652_v4  ;;  %562 = vset.pattern.permute.xlu0 %v652_v4 }
   0xb   :  { %55 = vperm.xlu1 %563, %v713_v3   ;;  %51 = vperm.xlu0 %562, %v25_v1  }
   0xf   :  { %564 = vset.pattern.permute.xlu1 %v653_v5  ;;  %565 = vset.pattern.permute.xlu0 %v653_v5 }
  0x10   :  { %59 = vperm.xlu1 %564, %v25_v1   ;;  %63 = vperm.xlu0 %565, %v713_v3  }
  0x14   :  { %566 = vset.pattern.permute.xlu1 %v654_v6  ;;  %567 = vset.pattern.permute.xlu0 %v655_v7 }
  0x15   :  { %67 = vperm.xlu1 %566, %v25_v1   ;;  %75 = vperm.xlu0 %567, %v25_v1  }
  0x19   :  { %71 = vperm.xlu1 %566, %v713_v3   ;;  %570 = vset.pattern.permute.xlu0 %v656_v8 }
  0x1a   :  { %87 = vperm.xlu0 %570, %v713_v3  }
  0x1d   :  { %568 = vset.pattern.permute.xlu1 %v655_v7 }
  0x1e   :  { %79 = vperm.xlu1 %568, %v713_v3   ;;  %572 = vset.pattern.permute.xlu0 %v657_v9 }
  0x1f   :  { %99 = vperm.xlu0 %572, %v25_v1  }
  0x22   :  { %569 = vset.pattern.permute.xlu1 %v656_v8 }
  0x23   :  { %83 = vperm.xlu1 %569, %v25_v1   ;;  %575 = vset.pattern.permute.xlu0 %v658_v10 }
  0x24   :  { %111 = vperm.xlu0 %575, %v713_v3  }
  0x27   :  { %571 = vset.pattern.permute.xlu1 %v659_v11 }
  0x28   :  { %91 = vperm.xlu1 %571, %v25_v1   ;;  %577 = vset.pattern.permute.xlu0 %v660_v12 }
  0x29   :  { %123 = vperm.xlu0 %577, %v25_v1  }
  0x2c   :  { %95 = vperm.xlu1 %571, %v713_v3  }
  0x30   :  { %573 = vset.pattern.permute.xlu1 %v657_v9 }
  0x31   :  { %103 = vperm.xlu1 %573, %v713_v3  }
  0x35   :  { %574 = vset.pattern.permute.xlu1 %v658_v10 }
  0x36   :  { %107 = vperm.xlu1 %574, %v25_v1  }
  0x3a   :  { %576 = vset.pattern.permute.xlu1 %v661_v13 }
  0x3b   :  { %115 = vperm.xlu1 %576, %v25_v1  }
  0x3f   :  { %119 = vperm.xlu1 %576, %v713_v3  }
  0x43   :  { %578 = vset.pattern.permute.xlu1 %v660_v12 }
  0x44   :  { %127 = vperm.xlu1 %578, %v713_v3  }
  0x81   :  { %v756_v22 = vpop.permute.xlu1 %43  ;;  %v758_v23 = vpop.permute.xlu0 %34 }
  0x82   :  { %1020 = vst [vmem:[#allocation5_spill] sm:$0xff] %v756_v22  ;;  %1021 = vst [vmem:[#allocation6_spill] sm:$0xff] %v758_v23 }
  0x85   :  { %v760_v24 = vpop.permute.xlu1 %47  ;;  %v762_v25 = vpop.permute.xlu0 %39 }
  0x8a   :  { %v764_v26 = vpop.permute.xlu1 %55  ;;  %v766_v27 = vpop.permute.xlu0 %51 }
  0x8b   :  { %1022 = vst [vmem:[#allocation7_spill] sm:$0xff] %v766_v27 }
  0x8f   :  { %v768_v28 = vpop.permute.xlu1 %59  ;;  %v770_v29 = vpop.permute.xlu0 %63 }
  0x90   :  { %1023 = vst [vmem:[#allocation8_spill] sm:$0xff] %v768_v28 }
  0x94   :  { %v772_v30 = vpop.permute.xlu1 %67  ;;  %v774_v31 = vpop.permute.xlu0 %75 }
  0x95   :  { %1024 = vst [vmem:[#allocation9_spill] sm:$0xff] %v772_v30  ;;  %1025 = vst [vmem:[#allocation10_spill] sm:$0xff] %v774_v31 }
  0x98   :  { %v776_v32 = vpop.permute.xlu1 %71 }
  0x99   :  { %v778_v33 = vpop.permute.xlu0 %87 }
  0x9d   :  { %v780_v34 = vpop.permute.xlu1 %79 }
  0x9e   :  { %v782_v35 = vpop.permute.xlu0 %99 }
  0x9f   :  { %1026 = vst [vmem:[#allocation11_spill] sm:$0xff] %v782_v35 }
  0xa2   :  { %v784_v36 = vpop.permute.xlu1 %83 }
  0xa3   :  { %1027 = vst [vmem:[#allocation12_spill] sm:$0xff] %v784_v36  ;;  %v786_v37 = vpop.permute.xlu0 %111 }
  0xa7   :  { %v788_v38 = vpop.permute.xlu1 %91 }
  0xa8   :  { %v790_v39 = vpop.permute.xlu0 %123 }
  0xab   :  { %v792_v40 = vpop.permute.xlu1 %95 }
  0xb0   :  { %v794_v41 = vpop.permute.xlu1 %103 }
  0xb5   :  { %v796_v42 = vpop.permute.xlu1 %107 }
  0xba   :  { %v798_v43 = vpop.permute.xlu1 %115 }
  0xbd   :  { %438 = sbr.rel (%p468_p1) target bundleno = 291 (0x123), region = 66 }
  0xbe   :  { %v800_v44 = vpop.permute.xlu1 %119 }
  0xc3   :  { %v802_v45 = vpop.permute.xlu1 %127 }
  0xc4 LB: > { %v831_v49 = vsub.s32 0, %v725_v15  ;;  %v154_v50 = vsub.s32 1, %v725_v15  ;;  %v160_v51 = vsub.s32 2, %v725_v15  ;;  %v166_v52 = vsub.s32 3, %v725_v15  ;;  %v1029_v23 = vld [vmem:[#allocation6_spill] sm:$0xff]  ;;  %v1030_v22 = vld [vmem:[#allocation5_spill] sm:$0xff]  ;;  %s628_s13 = sphi %s819_s13, %s137_s13   ;;  %v624_v48 = vphi %v817_v48, %v1043_v48   ;;  %v620_v21 = vphi %v133_v21, %v1042_v21  }
  0xc5   : > { %v172_v55 = vsub.s32 4, %v725_v15  ;;  %v178_v56 = vsub.s32 5, %v725_v15  ;;  %v184_v59 = vsub.s32 6, %v725_v15  ;;  %v190_v60 = vsub.s32 7, %v725_v15  ;;  %v1031_v27 = vld [vmem:[#allocation7_spill] sm:$0xff]  ;;  %v1032_v28 = vld [vmem:[#allocation8_spill] sm:$0xff] }
  0xc6   : > { %v838_v53 = vrot.slane %v624_v48, %v831_v49  ;;  %v841_v54 = vrot.slane %v624_v48, %v154_v50  ;;  %v846_v57 = vrot.slane %v624_v48, %v160_v51  ;;  %v849_v58 = vrot.slane %v624_v48, %v166_v52  ;;  %v1033_v30 = vld [vmem:[#allocation9_spill] sm:$0xff]  ;;  %v1034_v31 = vld [vmem:[#allocation10_spill] sm:$0xff]  ;;  %v1035_v36 = vld [vmem:[#allocation12_spill] sm:$0xff]  ;;  %s886_s14 = sshll.u32 %s628_s13, 4 }
  0xc7   : > { %v858_v63 = vrot.slane %v624_v48, %v172_v55  ;;  %v179_v0 = vrot.slane %v624_v48, %v178_v56  ;;  %v185_v4 = vrot.slane %v624_v48, %v184_v59  ;;  %v867_v5 = vrot.slane %v624_v48, %v190_v60  ;;  %v1036_v35 = vld [vmem:[#allocation11_spill] sm:$0xff]  ;;  %s286_s15 = scalar_lea.vmem [#allocation2], %s886_s14  ;;  %s143_s18 = scalar_lea.vmem %s1014_s2, %s886_s14 }
  0xc8   : > { %v150_v61 = vadd.f32 %v838_v53, %v1029_v23  ;;  %v156_v62 = vadd.f32 %v841_v54, %v1030_v22  ;;  %v162_v1 = vadd.f32 %v846_v57, %v1031_v27  ;;  %v168_v3 = vadd.f32 %v849_v58, %v1032_v28  ;;  %s325_s21 = scalar_lea.vmem %s1016_s6, %s886_s14 }
  0xc9   : > { %v174_v6 = vadd.f32 %v858_v63, %v1033_v30  ;;  %v180_v7 = vadd.f32 %v179_v0, %v1034_v31  ;;  %v197_v8 = vrot.slane %v620_v21, %v831_v49  ;;  %v203_v9 = vrot.slane %v620_v21, %v154_v50 }
  0xca   : > { %v186_v10 = vadd.f32 %v185_v4, %v1035_v36  ;;  %v192_v11 = vadd.f32 %v867_v5, %v788_v38  ;;  %v209_v12 = vrot.slane %v620_v21, %v160_v51  ;;  %v215_v13 = vrot.slane %v620_v21, %v166_v52 }
  0xcb   : > { %v198_v14 = vadd.f32 %v197_v8, %v1036_v35  ;;  %v204_v20 = vadd.f32 %v203_v9, %v796_v42  ;;  %vm218_vm1 = vcmp.gt.f32.partialorder %v156_v62, %v150_v61  ;;  %v1018_v50 = vmov 0  }
  0xcc   : > { %v210_v46 = vadd.f32 %v209_v12, %v798_v43  ;;  %v216_v47 = vadd.f32 %v215_v13, %v790_v39  ;;  %v220_v55 = vsel %vm218_vm1, %v156_v62, %v150_v61  ;;  %v222_v56 = vsel %vm218_vm1, 1, %v1018_v50 }
  0xcd   : > { %vm224_vm2 = vcmp.gt.f32.partialorder %v168_v3, %v162_v1  ;;  %vm230_vm3 = vcmp.gt.f32.partialorder %v180_v7, %v174_v6  ;;  %v664_v60 = vmov 2   ;;  %v665_v52 = vmov 4  }
  0xce   : > { %v226_v59 = vsel %vm224_vm2, %v168_v3, %v162_v1  ;;  %v228_v51 = vsel %vm224_vm2, 3, %v664_v60  ;;  %v232_v2 = vsel %vm230_vm3, %v180_v7, %v174_v6  ;;  %v234_v22 = vsel %vm230_vm3, 5, %v665_v52 }
  0xcf   : > { %vm236_vm4 = vcmp.gt.f32.partialorder %v192_v11, %v186_v10  ;;  %vm242_vm5 = vcmp.gt.f32.partialorder %v204_v20, %v198_v14  ;;  %v666_v27 = vmov 6   ;;  %v667_v31 = vmov 8  }
  0xd0   : > { %v238_v23 = vsel %vm236_vm4, %v192_v11, %v186_v10  ;;  %v240_v28 = vsel %vm236_vm4, 7, %v666_v27  ;;  %v244_v30 = vsel %vm242_vm5, %v204_v20, %v198_v14  ;;  %v246_v61 = vsel %vm242_vm5, 9, %v667_v31 }
  0xd1   : > { %vm248_vm6 = vcmp.gt.f32.partialorder %v216_v47, %v210_v46  ;;  %vm254_vm7 = vcmp.gt.f32.partialorder %v226_v59, %v220_v55  ;;  %vm260_vm8 = vcmp.gt.f32.partialorder %v238_v23, %v232_v2  ;;  %v668_v1 = vmov 10  }
  0xd2   : > { %v250_v62 = vsel %vm248_vm6, %v216_v47, %v210_v46  ;;  %v252_v3 = vsel %vm248_vm6, 11, %v668_v1  ;;  %v256_v50 = vsel %vm254_vm7, %v226_v59, %v220_v55  ;;  %v258_v6 = vsel %vm254_vm7, %v228_v51, %v222_v56 }
  0xd3   : > { %v262_v7 = vsel %vm260_vm8, %v238_v23, %v232_v2  ;;  %v264_v35 = vsel %vm260_vm8, %v240_v28, %v234_v22  ;;  %vm266_vm9 = vcmp.gt.f32.partialorder %v250_v62, %v244_v30  ;;  %v289_v14 = vstv %s628_s13  ;;  %s137_s13 = sadd.s32 1, %s628_s13  }
  0xd4   : > { %v268_v10 = vsel %vm266_vm9, %v250_v62, %v244_v30  ;;  %v270_v11 = vsel %vm266_vm9, %v252_v3, %v246_v61  ;;  %vm272_vm10 = vcmp.gt.f32.partialorder %v262_v7, %v256_v50  ;;  %v151_v46 = vadd.f32 %v838_v53, %v762_v25  ;;  %p136_p2 = scmp.ge.s32.totalorder %s137_s13, %s738_s28 }
  0xd5   : > { %v274_v20 = vsel %vm272_vm10, %v262_v7, %v256_v50  ;;  %v276_v36 = vsel %vm272_vm10, %v264_v35, %v258_v6  ;;  %v157_v47 = vadd.f32 %v841_v54, %v760_v24  ;;  %v163_v2 = vadd.f32 %v846_v57, %v764_v26 }
  0xd6   : > { %vm278_vm11 = vcmp.gt.f32.partialorder %v268_v10, %v274_v20  ;;  %v169_v22 = vadd.f32 %v849_v58, %v770_v29  ;;  %v175_v28 = vadd.f32 %v858_v63, %v776_v32  ;;  %v181_v30 = vadd.f32 %v179_v0, %v780_v34 }
  0xd7   : > { %v282_v23 = vsel %vm278_vm11, %v270_v11, %v276_v36  ;;  %v187_v35 = vadd.f32 %v185_v4, %v778_v33  ;;  %vm906_vm12 = vcmp.lt.s32.totalorder %v289_v14, %v743_v17  ;;  %v193_v54 = vadd.f32 %v867_v5, %v792_v40 }
  0xd8   : > { %287 = vst [vmem:[%s286_s15] sm:$0xff] %v282_v23  ;;  %v199_v36 = vadd.f32 %v197_v8, %v794_v41  ;;  %v205_v57 = vadd.f32 %v203_v9, %v786_v37  ;;  %v211_v58 = vadd.f32 %v209_v12, %v800_v44  ;;  %v217_v63 = vadd.f32 %v215_v13, %v802_v45 }
  0xd9   : > { %vm219_vm13 = vcmp.gt.f32.partialorder %v157_v47, %v151_v46  ;;  %vm225_vm14 = vcmp.gt.f32.partialorder %v169_v22, %v163_v2  ;;  %v1039_v4 = vmov 0   ;;  %vm231_vm15 = vcmp.gt.f32.partialorder %v181_v30, %v175_v28 }
  0xda   : > { %v221_v0 = vsel %vm219_vm13, %v157_v47, %v151_v46  ;;  %v223_v55 = vsel %vm219_vm13, 1, %v1039_v4  ;;  %v227_v50 = vsel %vm225_vm14, %v169_v22, %v163_v2  ;;  %v229_v56 = vsel %vm225_vm14, 3, %v664_v60  ;;  %v144_v60 = vld [vmem:[%s143_s18] sm:$0xff] }
  0xdb   : > { %vm237_vm0 = vcmp.gt.f32.partialorder %v193_v54, %v187_v35  ;;  %vm243_vm1 = vcmp.gt.f32.partialorder %v205_v57, %v199_v36  ;;  %vm249_vm2 = vcmp.gt.f32.partialorder %v217_v63, %v211_v58  ;;  %v233_v5 = vsel %vm231_vm15, %v181_v30, %v175_v28 }
  0xdc   : > { %v235_v8 = vsel %vm231_vm15, 5, %v665_v52  ;;  %v239_v9 = vsel %vm237_vm0, %v193_v54, %v187_v35  ;;  %v241_v12 = vsel %vm237_vm0, 7, %v666_v27  ;;  %v245_v13 = vsel %vm243_vm1, %v205_v57, %v199_v36 }
  0xdd   : > { %v247_v59 = vsel %vm243_vm1, 9, %v667_v31  ;;  %v251_v51 = vsel %vm249_vm2, %v217_v63, %v211_v58  ;;  %v253_v61 = vsel %vm249_vm2, 11, %v668_v1  ;;  %v280_v62 = vsel %vm278_vm11, %v268_v10, %v274_v20  ;;  %v145_v31 = vld [vmem:[%s143_s18 + $0x8] sm:$0xf] }
  0xde   : > { %vm255_vm3 = vcmp.gt.f32.partialorder %v227_v50, %v221_v0  ;;  %vm261_vm4 = vcmp.gt.f32.partialorder %v239_v9, %v233_v5  ;;  %vm267_vm5 = vcmp.gt.f32.partialorder %v251_v51, %v245_v13  ;;  %v291_v27 = vsel %vm906_vm12, 1, %v1039_v4 }
  0xdf   : > { %v257_v3 = vsel %vm255_vm3, %v227_v50, %v221_v0  ;;  %v259_v6 = vsel %vm255_vm3, %v229_v56, %v223_v55  ;;  %v263_v7 = vsel %vm261_vm4, %v239_v9, %v233_v5  ;;  %v265_v11 = vsel %vm261_vm4, %v241_v12, %v235_v8 }
  0xe0   : > { %v269_v14 = vsel %vm267_vm5, %v251_v51, %v245_v13  ;;  %v271_v46 = vsel %vm267_vm5, %v253_v61, %v247_v59  ;;  %vm273_vm6 = vcmp.gt.f32.partialorder %v263_v7, %v257_v3  ;;  %v295_v10 = vrot.slane %v291_v27, %v831_v49 }
  0xe1   : > { %v275_v52 = vsel %vm273_vm6, %v263_v7, %v257_v3  ;;  %v277_v1 = vsel %vm273_vm6, %v265_v11, %v259_v6  ;;  %v284_v20 = vadd.f32 %v280_v62, %v144_v60  ;;  %vm297_vm8 = vcmask 1043456  }
  0xe2   : > { %vm279_vm7 = vcmp.gt.f32.partialorder %v269_v14, %v275_v52  ;;  %vm926_vm9 = vcmp.eq.s32.totalorder %v295_v10, 1 }
  0xe3   : > { %v281_v47 = vsel %vm279_vm7, %v269_v14, %v275_v52  ;;  %v283_v2 = vsel %vm279_vm7, %v271_v46, %v277_v1  ;;  %v328_v28 = vsel %vm926_vm9, %v284_v20, %v624_v48  }
  0xe4   : > { %v285_v23 = vadd.f32 %v281_v47, %v145_v31  ;;  %288 = vst [vmem:[%s286_s15 + $0x8] sm:$0xf] %v283_v2  ;;  %v1045_v47 = vmov (%p136_p2), %v328_v28 }
  0xe6   : > { %v298_v30 = vsel %vm297_vm8, %v285_v23, -inf  ;;  %v329_v49 = vsel %vm926_vm9, %v285_v23, %v620_v21  }
  0xe7   : > { %v299_v35 = vmax.f32 %v284_v20, %v298_v30  ;;  %v1044_v46 = vmov (%p136_p2), %v329_v49 }
  0xe9   : > { %v300_v53 = vrot.slane %v299_v35, 4 }
  0xeb   : > { %v301_v54 = vmax.f32 %v299_v35, %v300_v53 }
  0xed   : > { %v302_v36 = vrot.slane %v301_v54, 2 }
  0xef   : > { %v303_v57 = vmax.f32 %v301_v54, %v302_v36 }
  0xf1   : > { %v304_v58 = vrot.slane %v303_v57, 1 }
  0xf3   : > { %v305_v63 = vmax.f32 %v303_v57, %v304_v58 }
  0xf5   : > { %v306_v0 = vsub.f32 %v284_v20, %v305_v63  ;;  %v307_v4 = vsub.f32 %v285_v23, %v305_v63 }
  0xf7   : > { %v308_v55 = vmul.f32 1.442695, %v306_v0  ;;  %v310_v50 = vmul.f32 1.442695, %v307_v4 }
  0xf9   : > { %579 = vpow2.f32 %v308_v55 }
  0xfa   : > { %581 = vpow2.f32 %v310_v50 }
 0x103   : > { %v580_v48 = vpop.eup %579 }
 0x104   : > { %v582_v56 = vpop.eup %581 }
 0x105   : > { %v312_v5 = vsel %vm297_vm8, %v582_v56, 0.0 }
 0x106   : > { %v313_v8 = vadd.f32 %v580_v48, %v312_v5 }
 0x108   : > { %v314_v21 = vrot.slane %v313_v8, 4 }
 0x10a   : > { %v315_v9 = vadd.f32 %v314_v21, %v313_v8  ;;  %v1042_v21 = vmov %v329_v49 }
 0x10c   : > { %v316_v12 = vrot.slane %v315_v9, 2 }
 0x10e   : > { %v317_v13 = vadd.f32 %v316_v12, %v315_v9 }
 0x110   : > { %v318_v59 = vrot.slane %v317_v13, 1 }
 0x112   : > { %v319_v51 = vadd.f32 %v318_v59, %v317_v13 }
 0x114   : > { %583 = vrcp.f32 %v319_v51 }
 0x11c   :  { %139 = sbr.rel (!%p136_p2) target bundleno = 196 (0xc4), region = 72 }
 0x11e   : > { %v584_v61 = vpop.eup %583 }
 0x11f   : > { %v321_v62 = vmul.f32 %v584_v61, %v580_v48  ;;  %v322_v60 = vmul.f32 %v584_v61, %v582_v56  ;;  %v1043_v48 = vmov %v328_v28 }
 0x121   : > { %v323_v3 = vsel %vm926_vm9, %v321_v62, 0.0  ;;  %v324_v6 = vsel %vm926_vm9, %v322_v60, 0.0 }
 0x122   : > { %326 = vst [vmem:[%s325_s21] sm:$0xff] %v323_v3  ;;  %327 = vst [vmem:[%s325_s21 + $0x8] sm:$0xf] %v324_v6 }
 0x123 PF:  { %p460_p3 = scmp.ge.s32.totalorder %s1011_s0, 8  ;;  %v636_v47 = vphi %v809_v47, %v1045_v47   ;;  %v632_v46 = vphi %v1028_v46, %v1044_v46  }
 0x124   :  { %s638_s24 = smov (!%p460_p3), %s738_s28  }
 0x125   :  { %447 = sbr.rel (%p460_p3) target bundleno = 311 (0x137), region = 77 }
 0x12c LB: > { %s464_s2 = sshll.u32 %s640_s24, 4  ;;  %s340_s26 = scalar_lea.vmem %s1015_s5, %s640_s24  ;;  %v669_v24 = vmov 0   ;;  %v670_v25 = vmov 0.0   ;;  %s640_s24 = sphi %s638_s24, %s333_s24  }
 0x12d   : > { %s337_s30 = scalar_lea.vmem %s1016_s6, %s464_s2  ;;  %341 = vst [vmem:[%s340_s26] sm:$0x1] %v669_v24  ;;  %s333_s24 = sadd.s32 1, %s640_s24  }
 0x12e   : > { %338 = vst [vmem:[%s337_s30] sm:$0xff] %v670_v25  ;;  %339 = vst [vmem:[%s337_s30 + $0x8] sm:$0xf] %v670_v25  ;;  %p332_p4 = scmp.ge.s32.totalorder %s333_s24, 8 }
 0x130   :  { %335 = sbr.rel (!%p332_p4) target bundleno = 300 (0x12c), region = 83 }
 0x137 PF:  { %v1046_v26 = vmov 0   ;;  %vm354_vm10 = vcmask 1043456   ;;  %s983_s8 = smov (!%p468_p1), 0  }
 0x138   :  { %585 = vset.pattern.permute.xlu0 %v1046_v26 }
 0x139   :  { %349 = vperm.xlu0 %585, %v753_v19  }
 0x13d   :  { %344 = vperm.xlu0 %585, %v748_v18  }
 0x1b8   :  { %v350_v29 = vpop.permute.xlu0 %349 }
 0x1b9   :  { %v353_v32 = vadd.f32 %v632_v46, %v350_v29 }
 0x1bb   :  { %v355_v37 = vsel %vm354_vm10, %v353_v32, -inf }
 0x1bc   :  { %v345_v33 = vpop.permute.xlu0 %344 }
 0x1bd   :  { %v352_v34 = vadd.f32 %v636_v47, %v345_v33 }
 0x1bf   :  { %v356_v38 = vmax.f32 %v352_v34, %v355_v37 }
 0x1c1   :  { %v357_v39 = vrot.slane %v356_v38, 4 }
 0x1c3   :  { %v358_v40 = vmax.f32 %v356_v38, %v357_v39 }
 0x1c5   :  { %v359_v41 = vrot.slane %v358_v40, 2 }
 0x1c7   :  { %v360_v42 = vmax.f32 %v358_v40, %v359_v41 }
 0x1c9   :  { %v361_v43 = vrot.slane %v360_v42, 1 }
 0x1cb   :  { %v362_v44 = vmax.f32 %v360_v42, %v361_v43 }
 0x1cd   :  { %vm363_vm11 = vcmp.eq.f32.partialorder %v352_v34, %v362_v44  ;;  %vm364_vm12 = vcmp.eq.f32.partialorder %v353_v32, %v362_v44 }
 0x1ce   :  { %v365_v19 = vsel %vm363_vm11, %v725_v15, 12  ;;  %v366_v18 = vsel %vm364_vm12, %v729_v16, 12 }
 0x1cf   :  { %v367_v45 = vsel %vm354_vm10, %v366_v18, 2147483647 }
 0x1d0   :  { %vm368_vm13 = vcmp.lt.s32.totalorder %v365_v19, %v367_v45 }
 0x1d1   :  { %v369_v7 = vsel %vm368_vm13, %v365_v19, %v367_v45 }
 0x1d2   :  { %v370_v11 = vrot.slane %v369_v7, 4 }
 0x1d4   :  { %vm371_vm14 = vcmp.lt.s32.totalorder %v369_v7, %v370_v11 }
 0x1d5   :  { %v372_v14 = vsel %vm371_vm14, %v369_v7, %v370_v11 }
 0x1d6   :  { %v373_v46 = vrot.slane %v372_v14, 2 }
 0x1d7   :  { %453 = sbr.rel (%p468_p1) target bundleno = 501 (0x1f5), region = 88 }
 0x1d8   :  { %vm374_vm15 = vcmp.lt.s32.totalorder %v372_v14, %v373_v46 }
 0x1d9   :  { %v375_v27 = vsel %vm374_vm15, %v372_v14, %v373_v46 }
 0x1da   :  { %v376_v31 = vrot.slane %v375_v27, 1 }
 0x1dc   :  { %vm377_vm0 = vcmp.lt.s32.totalorder %v375_v27, %v376_v31 }
 0x1dd   :  { %v378_v52 = vsel %vm377_vm0, %v375_v27, %v376_v31  }
 0x1de   :  { %v642_v1 = vmov %v378_v52  }
 0x1df LB: > { %s466_s9 = sadd.s32 4294967295, %s738_s28  ;;  %v399_v10 = vsub.s32 0, %v725_v15  ;;  %s648_s8 = sphi %s983_s8, %s382_s8   ;;  %v644_v1 = vphi %v642_v1, %v413_v1  }
 0x1e0   : > { %s387_s10 = ssub.s32 %s466_s9, %s648_s8  ;;  %s382_s8 = sadd.s32 1, %s648_s8  }
 0x1e1   : > { %v400_v20 = vrot.slane %v644_v1, %v399_v10  ;;  %v388_v47 = vstv %s387_s10  ;;  %s391_s4 = scalar_lea.vmem %s1015_s5, %s387_s10  ;;  %s467_s11 = sshll.u32 %s387_s10, 4 }
 0x1e2   : > { %vm995_vm1 = vcmp.lt.s32.totalorder %v388_v47, %v743_v17  ;;  %s394_s12 = scalar_lea.vmem [#allocation2], %s467_s11  ;;  %p381_p5 = scmp.ge.s32.totalorder %s382_s8, %s738_s28 }
 0x1e3   : > { %vm401_vm2 = vcmp.eq.s32.totalorder %v725_v15, %v400_v20  ;;  %vm402_vm3 = vcmp.eq.s32.totalorder %v729_v16, %v400_v20  ;;  %v390_v22 = vsel %vm995_vm1, %v644_v1, 0  ;;  %v395_v23 = vld [vmem:[%s394_s12] sm:$0xff]  ;;  %v396_v28 = vld [vmem:[%s394_s12 + $0x8] sm:$0xf] }
 0x1e4   : > { %392 = vst [vmem:[%s391_s4] sm:$0x1] %v390_v22  ;;  %v403_v30 = vsel %vm401_vm2, %v395_v23, 0  ;;  %v404_v49 = vsel %vm402_vm3, %v396_v28, 0 }
 0x1e5   : > { %v405_v35 = vsel %vm354_vm10, %v404_v49, 0 }
 0x1e6   : > { %v406_v53 = vadd.s32 %v405_v35, %v403_v30 }
 0x1e8   : > { %v407_v54 = vrot.slane %v406_v53, 4 }
 0x1ea   : > { %v408_v36 = vadd.s32 %v407_v54, %v406_v53 }
 0x1ec   : > { %v409_v57 = vrot.slane %v408_v36, 2 }
 0x1ee   : > { %v410_v58 = vadd.s32 %v409_v57, %v408_v36  ;;  %384 = sbr.rel (!%p381_p5) target bundleno = 479 (0x1df), region = 94 }
 0x1f0   : > { %v411_v63 = vrot.slane %v410_v58, 1 }
 0x1f2   : > { %v412_v0 = vadd.s32 %v411_v63, %v410_v58 }
 0x1f4   : > { %v413_v1 = vsel %vm995_vm1, %v412_v0, %v644_v1  }
 0x1f5 PF:  {}

</bundles_post_ra>
